<compile_context>
chip_gen: v5e
topology: v5e:2x2
jax: 0.10.0
libtpu: 0.0.40
codegen_flags: <defaults>
</compile_context>

<pallas_src>
import jax
import jax.numpy as jnp
from jax.experimental import pallas as pl
from jax.experimental.pallas import tpu as pltpu

WEIGHT_CONSTRAINT = 2.0
# 2 MiB f32 x-tile; double-buffered x/out tiles + in-kernel intermediates stay
# well under the 32 MiB scoped-VMEM limit on v5e/v6e/v7x.
_MAX_BLOCK_B = 65536


def pima_kernel(x_ref, w1_ref, bw_ref, b2_ref, o_ref):
    x = x_ref[...]            # [8, TB]  batch on the lane axis
    w1 = w1_ref[...]          # [H, 8]   already max-norm scaled in the wrapper
    bw = bw_ref[...]          # [H, 2]   col 0 = b1, col 1 = output weight
    b1 = bw[:, 0:1]           # [H, 1]
    w2 = bw[:, 1:2]           # [H, 1]
    b2 = b2_ref[0, 0]         # scalar (SMEM)

    # --- hidden layer: relu(W1s @ x + b1) -> [H, TB] (MXU, f32 accumulate) ---
    h = jnp.dot(w1, x, preferred_element_type=jnp.float32) + b1
    h = jnp.maximum(h, 0.0)

    # dropout(0.1): identity in eval mode (see TODO at top)

    # --- output layer: contract H with a VPU multiply + sublane reduction
    # (skips the N=1 MXU matmul); result stays lane-dense along the batch ----
    logits = jnp.sum(h * w2, axis=0, keepdims=True) + b2      # [1, TB]
    o_ref[...] = jax.nn.sigmoid(logits).astype(o_ref.dtype)


def pima_forward(x, w1, b1, w2, b2, *, block_b=None):
    """x: [B, 8]; w1: [H, 8]; b1: [H]; w2: [1, H]; b2: [1]. Returns [B, 1]."""
    B, in_features = x.shape
    H = w1.shape[0]

    # --- one-time weight preprocessing: max-norm constraint (dim=0 norm over
    # the H hidden rows, clamp to [wc/2, wc]) — hoisted out of the kernel ----
    norm = jnp.sqrt(jnp.sum(w1 * w1, axis=0, keepdims=True))     # [1, 8]
    norm = jnp.maximum(norm, WEIGHT_CONSTRAINT / 2.0)            # clamp(min)
    desired = jnp.minimum(norm, WEIGHT_CONSTRAINT)               # clamp(max)
    w1s = (w1 * (desired / norm)).astype(jnp.float32)            # [H, 8]

    # pack b1 and the output-layer weights into one resident [H, 2] tile
    bw = jnp.concatenate(
        [b1.reshape(H, 1), w2.reshape(H, 1)], axis=1).astype(jnp.float32)
    b2_s = b2.reshape(1, 1).astype(jnp.float32)                  # SMEM scalar

    # --- batch tile size (lane axis, multiple of 128) ------------------------
    # default: ~2 grid steps (both v7x TensorCores get work), capped for VMEM.
    if block_b is None:
        block_b = pl.cdiv(pl.cdiv(B, 2), 128) * 128
    block_b = min(max(128, pl.cdiv(int(block_b), 128) * 128), _MAX_BLOCK_B)
    block_b = min(block_b, pl.cdiv(B, 128) * 128)   # never exceed rounded batch

    # No padding: the last grid block hangs off the edge.  allow_input_fusion
    # lets XLA fold the transpose into the pallas_call input instead of
    # materializing a second copy of x in HBM (kernel is HBM-bound).
    x_t = x.T.astype(jnp.float32)                                # [8, B]

    grid = (pl.cdiv(B, block_b),)
    out = pl.pallas_call(
        pima_kernel,
        out_shape=jax.ShapeDtypeStruct((1, B), jnp.float32),
        grid_spec=pltpu.PrefetchScalarGridSpec(
            num_scalar_prefetch=0,
            grid=grid,
            in_specs=[
                pl.BlockSpec((in_features, block_b), lambda i: (0, i)),  # x tile
                pl.BlockSpec((H, in_features), lambda i: (0, 0)),        # W1s (resident)
                pl.BlockSpec((H, 2), lambda i: (0, 0)),                  # [b1 | w2] (resident)
                pl.BlockSpec(memory_space=pltpu.MemorySpace.SMEM),       # b2 scalar
            ],
            out_specs=pl.BlockSpec((1, block_b), lambda i: (0, i)),
        ),
        compiler_params=pltpu.CompilerParams(
            dimension_semantics=("parallel",),
            allow_input_fusion=[True, False, False, False],
            vmem_limit_bytes=32 * 1024 * 1024,
        ),
    )(x_t, w1s, bw, b2_s)

    return out.T     # back to [B, 1] (PyTorch output layout)


def init_params(key, n_neurons=12, in_features=8):
    # Deterministic kaiming_uniform_-style init (gain=sqrt(2), fan_in mode)
    k1, k2, k3, k4 = jax.random.split(key, 4)

    bound1 = (2.0 ** 0.5) * (3.0 / in_features) ** 0.5
    w1 = jax.random.uniform(k1, (n_neurons, in_features), jnp.float32,
                            minval=-bound1, maxval=bound1)
    bb1 = 1.0 / (in_features ** 0.5)
    b1 = jax.random.uniform(k2, (n_neurons,), jnp.float32,
                            minval=-bb1, maxval=bb1)

    bound2 = (2.0 ** 0.5) * (3.0 / n_neurons) ** 0.5
    w2 = jax.random.uniform(k3, (1, n_neurons), jnp.float32,
                            minval=-bound2, maxval=bound2)
    bb2 = 1.0 / (n_neurons ** 0.5)
    b2 = jax.random.uniform(k4, (1,), jnp.float32,
                            minval=-bb2, maxval=bb2)
    return w1, b1, w2, b2


def reference_forward(x, w1, b1, w2, b2):
    norm = jnp.sqrt(jnp.sum(w1 * w1, axis=0, keepdims=True))
    norm = jnp.maximum(norm, WEIGHT_CONSTRAINT / 2.0)
    desired = jnp.minimum(norm, WEIGHT_CONSTRAINT)
    w1s = w1 * (desired / norm)
    h = jnp.maximum(x @ w1s.T + b1[None, :], 0.0)
    return jax.nn.sigmoid(h @ w2.T + b2[None, :])


if __name__ == "__main__":
    key = jax.random.PRNGKey(0)
    k_x, k_p = jax.random.split(key)

    B, IN, H = 300, 8, 12           # non-multiple-of-128 batch exercises edge masking
    x = jax.random.normal(k_x, (B, IN), jnp.float32)
    w1, b1, w2, b2 = init_params(k_p, n_neurons=H, in_features=IN)

    ref = reference_forward(x, w1, b1, w2, b2)

    # Default block_b: ~2 grid steps (256-lane tiles here), last block masked.
    out = jax.jit(pima_forward)(x, w1, b1, w2, b2)
    out = jax.block_until_ready(out)
    assert out.shape == (B, 1)
    assert jnp.allclose(out, ref, atol=1e-5, rtol=1e-5)

    # Explicit small tile: grid=(3,), exercises multi-step batch grid.
    out2 = jax.jit(pima_forward, static_argnames="block_b")(
        x, w1, b1, w2, b2, block_b=128)
    out2 = jax.block_until_ready(out2)
    assert out2.shape == (B, 1)
    assert jnp.allclose(out2, ref, atol=1e-5, rtol=1e-5)

    print("KERNEL_OK")
</pallas_src>

<mosaic_0001>
module attributes {stable_mosaic.version = 11 : i64} {
  func.func @pima_kernel(%arg0: i32, %arg1: memref<8x256xf32, #tpu.memory_space<vmem>>, %arg2: memref<12x8xf32, #tpu.memory_space<vmem>>, %arg3: memref<12x2xf32, #tpu.memory_space<vmem>>, %arg4: memref<1x1xf32, #tpu.memory_space<smem>>, %arg5: memref<1x256xf32, #tpu.memory_space<vmem>>) attributes {dimension_semantics = [#tpu.dimension_semantics<parallel>], iteration_bounds = array<i64: 2>, scalar_prefetch = 0 : i64, scratch_operands = 0 : i64, tpu.core_type = #tpu.core_type<tc>, window_params = [{transform_indices = @transform_0, window_bounds = array<i64: 8, 256>}, {pipeline_mode = #tpu.pipeline_mode<synchronous>, transform_indices = @transform_1, window_bounds = array<i64: 12, 8>}, {pipeline_mode = #tpu.pipeline_mode<synchronous>, transform_indices = @transform_2, window_bounds = array<i64: 12, 2>}, {transform_indices = @transform_3, window_bounds = array<i64: 1, 1>}, {transform_indices = @transform_4, window_bounds = array<i64: 1, 256>}]} {
    %c0 = arith.constant 0 : index
    %c0_0 = arith.constant 0 : index
    %0 = vector.load %arg1[%c0, %c0_0] : memref<8x256xf32, #tpu.memory_space<vmem>>, vector<8x256xf32>
    %c0_1 = arith.constant 0 : index
    %c0_2 = arith.constant 0 : index
    %1 = vector.load %arg2[%c0_1, %c0_2] : memref<12x8xf32, #tpu.memory_space<vmem>>, vector<12x8xf32>
    %c0_3 = arith.constant 0 : index
    %c0_4 = arith.constant 0 : index
    %2 = vector.load %arg3[%c0_3, %c0_4] : memref<12x2xf32, #tpu.memory_space<vmem>>, vector<12x2xf32>
    %3 = vector.extract_strided_slice %2 {offsets = [0, 0], sizes = [12, 1], strides = [1, 1]} : vector<12x2xf32> to vector<12x1xf32>
    %4 = vector.extract_strided_slice %2 {offsets = [0, 1], sizes = [12, 1], strides = [1, 1]} : vector<12x2xf32> to vector<12x1xf32>
    %c0_5 = arith.constant 0 : index
    %c0_6 = arith.constant 0 : index
    %5 = memref.load %arg4[%c0_5, %c0_6] : memref<1x1xf32, #tpu.memory_space<smem>>
    %cst = arith.constant dense<0.000000e+00> : vector<12x256xf32>
    %6 = tpu.matmul %1, %0, %cst {dimension_numbers = #tpu.dot_dimension_numbers<[1], [0], [0], [1], [0, 0, 1, 1], [], []>} : vector<12x8xf32>, vector<8x256xf32>, vector<12x256xf32> -> vector<12x256xf32>
    %7 = vector.broadcast %3 : vector<12x1xf32> to vector<12x256xf32>
    %8 = arith.addf %6, %7 : vector<12x256xf32>
    %cst_7 = arith.constant 0.000000e+00 : f32
    %9 = vector.broadcast %cst_7 : f32 to vector<12x256xf32>
    %10 = arith.maximumf %8, %9 : vector<12x256xf32>
    %11 = vector.broadcast %4 : vector<12x1xf32> to vector<12x256xf32>
    %12 = arith.mulf %10, %11 : vector<12x256xf32>
    %cst_8 = arith.constant dense<0.000000e+00> : vector<256xf32>
    %13 = vector.multi_reduction <add>, %12, %cst_8 [0] : vector<12x256xf32> to vector<256xf32>
    %14 = vector.shape_cast %13 : vector<256xf32> to vector<1x256xf32>
    %15 = vector.broadcast %5 : f32 to vector<1x256xf32>
    %16 = arith.addf %14, %15 : vector<1x256xf32>
    %17 = arith.negf %16 : vector<1x256xf32>
    %18 = math.exp %17 : vector<1x256xf32>
    %cst_9 = arith.constant 1.000000e+00 : f32
    %19 = vector.broadcast %cst_9 : f32 to vector<1x256xf32>
    %20 = arith.addf %19, %18 : vector<1x256xf32>
    %21 = arith.divf %19, %20 : vector<1x256xf32>
    %c0_10 = arith.constant 0 : index
    %c0_11 = arith.constant 0 : index
    %22 = vector.load %arg5[%c0_10, %c0_11] : memref<1x256xf32, #tpu.memory_space<vmem>>, vector<1x256xf32>
    tpu.vector_store %arg5[%c0_10, %c0_11], %21 {strides = array<i32>} : memref<1x256xf32, #tpu.memory_space<vmem>>, vector<1x256xf32>,
    return
  }
  func.func @transform_0(%arg0: i32) -> (i32, i32) {
    %c0_i32 = arith.constant 0 : i32
    %c0_i32_0 = arith.constant 0 : i32
    return %c0_i32, %arg0 : i32, i32
  }
  func.func @transform_1(%arg0: i32) -> (i32, i32) {
    %c0_i32 = arith.constant 0 : i32
    %c0_i32_0 = arith.constant 0 : i32
    %c0_i32_1 = arith.constant 0 : i32
    return %c0_i32, %c0_i32_0 : i32, i32
  }
  func.func @transform_2(%arg0: i32) -> (i32, i32) {
    %c0_i32 = arith.constant 0 : i32
    %c0_i32_0 = arith.constant 0 : i32
    %c0_i32_1 = arith.constant 0 : i32
    return %c0_i32, %c0_i32_0 : i32, i32
  }
  func.func @transform_3(%arg0: i32) -> (i32, i32) {
    %c0_i32 = arith.constant 0 : i32
    %c0_i32_0 = arith.constant 0 : i32
    %c0_i32_1 = arith.constant 0 : i32
    return %c0_i32, %c0_i32_0 : i32, i32
  }
  func.func @transform_4(%arg0: i32) -> (i32, i32) {
    %c0_i32 = arith.constant 0 : i32
    %c0_i32_0 = arith.constant 0 : i32
    return %c0_i32, %arg0 : i32, i32
  }
}

</mosaic_0001>

<bundles_post_ra>
// kernel: pima_forward.2
= control target key start
LH: loop header
LB: loop body
LE: loop exit
PB: predicated region body
PF: predicated region fallthrough
CT: control target
= control target key end

     0   :  { %s786_s0 = inlined_call_operand.vmem [shape: f32[12,8], index: 0, kind: input, shape index: {}]   ;;  %s787_s1 = inlined_call_operand.vmem [shape: f32[12,2], index: 1, kind: input, shape index: {}]   ;;  %s788_s2 = inlined_call_operand.<no memory space> [shape: f32[1,1], index: 2, kind: input, shape index: {}]   ;;  %s789_s3 = inlined_call_operand.vmem [shape: f32[300,8], index: 3, kind: input, shape index: {}]   ;;  %s790_s4 = inlined_call_operand.hbm [shape: f32[1,300], index: 4, kind: output, shape index: {}]  }
   0x1   :  { %9 = sst [smem:[#allocation2]] %s788_s2 }
   0x2   :  { %10 = vsyncpa [#allocation4], 0 }
   0x3   :  { %12 = vsyncpa [#allocation4 + $0x1], 0  ;;  %s651_s17 = smov 0   ;;  %s653_s18 = smov 0  }
   0x4   :  { %s655_s19 = smov 0   ;;  %s657_s20 = smov 0  }
   0x5 LB: > { %s471_s2 = sadd.s32 4294967295, %s618_s20   ;;  %s472_s21 = sadd.s32 4294967294, %s618_s20   ;;  %s618_s20 = sphi %s657_s20, %s798_s20   ;;  %s614_s19 = sphi %s655_s19, %s797_s19   ;;  %s610_s18 = sphi %s653_s18, %s796_s18   ;;  %s606_s17 = sphi %s651_s17, %s795_s17  }
   0x6   : > { %s674_s22 = sadd.s32 1, %s618_s20   ;;  %s114_s23 = sadd.s32 1, %s614_s19 }
   0x7   : > { %s111_s24 = ssub.s32 %s618_s20, %s674_s22  ;;  %p124_p0 = scmp.ne.s32.totalorder %s614_s19, %s610_s18 }
   0x8   : > { %p112_p1 = scmp.eq.s32.totalorder %s111_s24, 0  ;;  %p125_p2 = scmp.eq.s32.totalorder %s471_s2, 1 }
   0x9   : > { %p130_p3 = scmp.ne.s32.totalorder %s610_s18, %s606_s17  ;;  %p131_p4 = scmp.eq.s32.totalorder %s472_s21, 1 }
   0xa   : > { %s684_s25 = scalar_select %p112_p1, %s614_s19, %s114_s23  }
   0xb   : > { %p686_p5 = por %p125_p2, %p124_p0  ;;  %p690_p6 = por %p131_p4, %p130_p3 }
   0xc   : > { %p475_p7 = scmp.ge.s32.totalorder %s618_s20, 1  ;;  %p175_p8 = scmp.lt.s32.totalorder %s618_s20, 3 }
   0xe   : > { %p176_p9 = pnand %p475_p7, %p175_p8 }
   0xf   : > { %s696_s28 = sshll.u32 (!%p176_p9), %s471_s2, 1  ;;  %s202_s23 = sand.u32 (!%p176_p9), 1, %s610_s18  }
  0x10   : > { %179 = sbr.rel (%p176_p9) target bundleno = 245 (0xf5), region = 36  ;;  %p210_p10 = scmp.lt.s32.totalorder (!%p176_p9), %s696_s28, 2 }
  0x11   : > { %s228_s29 = sadd.s32 (!%p176_p9), 1, %s696_s28  ;;  %s243_s24 = sld [smem:[#allocation2]] (!%p176_p9) }
  0x12   : > { %s229_s6 = ssub.s32 (!%p176_p9), 2, %s228_s29  ;;  %s476_s29 = sshll.u32 (!%p176_p9), %s202_s23, 1 }
  0x13   : > { %p230_p11 = scmp.lt.s32.totalorder (!%p176_p9), %s229_s6, 0  ;;  %s204_s30 = scalar_lea.vmem (!%p176_p9), [#allocation3], %s476_s29 }
  0x14   : > { %s727_s5 = scalar_lea.sflag (!%p176_p9), [#allocation4], %s202_s23 }
  0x15   : > { %v620_v0 = vmov 0   ;;  %v242_v1 = vld [vmem:[%s787_s1 + $0x8] sm:$0xf]  ;;  %v621_v2 = vmov 1   ;;  %s211_s7 = scalar_select %p210_p10, %s696_s28, 2  ;;  %v239_v3 = vld [vmem:[%s786_s0] sm:$0xff] }
  0x16   : > { %534 = vset.pattern.permute.xlu0 %v620_v0  ;;  %535 = vset.pattern.permute.xlu1 %v621_v2  ;;  %vm254_vm0 = vcmask 64512   ;;  %v240_v4 = vld [vmem:[%s786_s0 + $0x8] sm:$0xf]  ;;  %s231_s16 = scalar_select %p230_p11, 0, 255  ;;  %v241_v7 = vld [vmem:[%s787_s1] sm:$0xff] }
  0x17   : > { %251 = vperm.xlu0 %534, %v242_v1   ;;  %316 = vperm.xlu1 %535, %v242_v1   ;;  %s478_s8 = sshll.u32 %s211_s7, 3  ;;  %vm323_vm1 = vcmask 1043456   ;;  %v340_v41 = vstv %s243_s24  ;;  %vm384_vm9 = vcmask 1040384   ;;  %s401_s6 = ssub.s32 (%p686_p5), 3, %s696_s28 }
  0x18   : > { %s213_s11 = scalar_lea.vmem %s789_s3, %s478_s8  ;;  %p402_p12 = scmp.lt.s32.totalorder (%p686_p5), %s401_s6, 2 }
  0x19   : > { %v223_v5 = vld [vmem:[%s213_s11] sm:$0xff]  ;;  %v480_v6 = vld [vmem:[%s213_s11 + $0x8] sm:%s231_s16] }
  0x1a   : > { %276 = vmatpush.msra.mxu0 %v223_v5  ;;  %492 = vmatpush.msra.mxu2 %v223_v5 }
  0x1b   : > { %481 = vmatmul.msk.f32.vlgmr.msra.gmra.mxu0 %vm254_vm0, %v239_v3  ;;  %482 = vmatmul.msk.f32.vlgmr.msra.gmra.mxu2 %vm254_vm0, %v240_v4 }
  0x1c   : > { %299 = vmatpush.msra.mxu1 %v480_v6  ;;  %493 = vmatpush.msra.mxu3 %v480_v6 }
  0x1d   : > { %483 = vmatmul.msk.f32.vlgmr.msra.gmra.mxu1 %vm254_vm0, %v239_v3  ;;  %484 = vmatmul.msk.f32.vlgmr.msra.gmra.mxu3 %vm254_vm0, %v240_v4  ;;  %v387_v4 = vlaneseq }
  0x1f   : > { %246 = vperm.xlu0 %534, %v241_v7   ;;  %312 = vperm.xlu1 %535, %v241_v7   ;;  %vm389_vm11 = vcmp.lt.s32.totalorder %v387_v4, 256 }
  0x27   : > { %536 = vset.pattern.permute.xlu0 %v621_v2 }
  0x89   : > { %v252_v8 = vpop.permute.xlu0 %251  ;;  %v317_v9 = vpop.permute.xlu1 %316 }
  0x91   : > { %v247_v10 = vpop.permute.xlu0 %246  ;;  %v313_v19 = vpop.permute.xlu1 %312 }
  0x98   : > { %v278_v11 = vpop.f32.mrf.mxu0 }
  0x99   : > { %v279_v13 = vadd.f32 %v278_v11, %v247_v10 }
  0x9a   : > { %v301_v12 = vpop.f32.mrf.mxu1 }
  0x9b   : > { %v302_v14 = vadd.f32 %v301_v12, %v247_v10  ;;  %v307_v17 = vmax.f32 %v279_v13, 0.0 }
  0x9d   : > { %v308_v22 = vmax.f32 %v302_v14, 0.0  ;;  %v319_v25 = vmul.f32 %v313_v19, %v307_v17 }
  0x9e   : > { %v281_v15 = vpop.f32.mrf.mxu2 }
  0x9f   : > { %v282_v16 = vadd.f32 %v281_v15, %v252_v8  ;;  %v320_v28 = vmul.f32 %v313_v19, %v308_v22 }
  0xa0   : > { %v304_v18 = vpop.f32.mrf.mxu3 }
  0xa1   : > { %v309_v20 = vmax.f32 %v282_v16, 0.0  ;;  %v305_v21 = vadd.f32 %v304_v18, %v252_v8 }
  0xa3   : > { %v321_v23 = vmul.f32 %v317_v9, %v309_v20  ;;  %v310_v24 = vmax.f32 %v305_v21, 0.0 }
  0xa5   : > { %v324_v26 = vsel %vm323_vm1, %v321_v23, 0.0  ;;  %v322_v27 = vmul.f32 %v317_v9, %v310_v24 }
  0xa6   : > { %v325_v29 = vadd.f32 %v324_v26, %v319_v25 }
  0xa7   : > { %v332_v30 = vsel %vm323_vm1, %v322_v27, 0.0 }
  0xa8   : > { %v326_v31 = vrot.slane %v325_v29, 4  ;;  %v333_v32 = vadd.f32 %v332_v30, %v320_v28 }
  0xaa   : > { %v327_v33 = vadd.f32 %v326_v31, %v325_v29  ;;  %v334_v34 = vrot.slane %v333_v32, 4 }
  0xac   : > { %v328_v35 = vrot.slane %v327_v33, 2  ;;  %v335_v36 = vadd.f32 %v334_v34, %v333_v32 }
  0xae   : > { %v329_v37 = vadd.f32 %v328_v35, %v327_v33  ;;  %v336_v38 = vrot.slane %v335_v36, 2 }
  0xb0   : > { %v330_v39 = vrot.slane %v329_v37, 1  ;;  %v337_v40 = vadd.f32 %v336_v38, %v335_v36 }
  0xb2   : > { %v331_v42 = vadd.f32 %v330_v39, %v329_v37  ;;  %v338_v43 = vrot.slane %v337_v40, 1 }
  0xb4   : > { %v341_v44 = vadd.f32 %v340_v41, %v331_v42  ;;  %v339_v45 = vadd.f32 %v338_v43, %v337_v40 }
  0xb6   : > { %v485_v46 = vmul.f32 -1.442695, %v341_v44  ;;  %v342_v47 = vadd.f32 %v340_v41, %v339_v45 }
  0xb8   : > { %537 = vpow2.f32 %v485_v46  ;;  %v486_v48 = vmul.f32 -1.442695, %v342_v47 }
  0xba   : > { %539 = vpow2.f32 %v486_v48 }
  0xbe   : > { %v538_v49 = vpop.eup %537 }
  0xbf   : > { %v349_v50 = vadd.f32 1.0, %v538_v49 }
  0xc0   : > { %v540_v51 = vpop.eup %539 }
  0xc1   : > { %541 = vrcp.f32 %v349_v50  ;;  %v350_v52 = vadd.f32 1.0, %v540_v51  ;;  %vm356_vm4 = vweird.f32 %v349_v50  ;;  %v362_v0 = vand.u32 2147483648, %v349_v50 }
  0xc2   : > { %v360_v2 = vand.u32 2147483647, %v349_v50 }
  0xc3   : > { %543 = vrcp.f32 %v350_v52  ;;  %v377_v60 = vand.u32 2147483648, %v350_v52  ;;  %v375_v63 = vand.u32 2147483647, %v350_v52  ;;  %vm371_vm6 = vweird.f32 %v350_v52 }
  0xc4   : > { %v363_v8 = vor.u32 1.1754944e-38, %v362_v0  ;;  %vm361_vm10 = vcmp.eq.f32.partialorder %v360_v2, 8.507059e+37 }
  0xc5   : > { %v378_v5 = vor.u32 1.1754944e-38, %v377_v60  ;;  %vm376_vm8 = vcmp.eq.f32.partialorder %v375_v63, 8.507059e+37 }
  0xc7   : > { %v542_v53 = vpop.eup %541 }
  0xc8   : > { %v352_v54 = vmul.f32 %v542_v53, %v349_v50  ;;  %vm357_vm2 = vweird.f32 %v542_v53 }
  0xc9   : > { %v544_v55 = vpop.eup %543  ;;  %vm717_vm5 = vmor %vm356_vm4, %vm357_vm2 }
  0xca   : > { %v353_v56 = vsub.f32 1.0, %v352_v54  ;;  %v367_v57 = vmul.f32 %v544_v55, %v350_v52  ;;  %vm372_vm3 = vweird.f32 %v544_v55 }
  0xcb   : > { %vm373_vm7 = vmor %vm371_vm6, %vm372_vm3 }
  0xcc   : > { %v354_v58 = vmul.f32 %v542_v53, %v353_v56  ;;  %v368_v59 = vsub.f32 1.0, %v367_v57 }
  0xce   : > { %v355_v61 = vadd.f32 %v542_v53, %v354_v58  ;;  %v369_v62 = vmul.f32 %v544_v55, %v368_v59 }
  0xd0   : > { %v370_v3 = vadd.f32 %v544_v55, %v369_v62  ;;  %v359_v6 = vsel %vm717_vm5, %v542_v53, %v355_v61 }
  0xd1   : > { %v364_v11 = vsel %vm361_vm10, %v363_v8, %v359_v6 }
  0xd2   : > { %v374_v7 = vsel %vm373_vm7, %v544_v55, %v370_v3 }
  0xd3   : > { %v379_v9 = vsel %vm376_vm8, %v378_v5, %v374_v7  ;;  %399 = sbr.rel (!%p686_p5) target bundleno = 245 (0xf5), region = 40 }
  0xd4   : > { %v383_v10 = vrot.slane %v379_v9, 7 }
  0xd6   : > { %v385_v12 = vsel %vm384_vm9, %v364_v11, %v383_v10 }
  0xd7   : > { %391 = vst.msk [vmem:[%s204_s30] sm:$0x3] %vm389_vm11, %v385_v12 }
  0xd8   : > { %s800_s6 = smov (!%p402_p12, %s401_s6), 2 }
  0xd9   : > { %s404_s7 = ssub.s32 2, %s800_s6 }
  0xda   : > { %s405_s8 = sshll.u32 %s404_s7, 4 }
  0xdb   : > { %406 = vsyncadd %s727_s5, %s405_s8  ;;  %p489_p13 = scmp.ne.s32.totalorder %s800_s6, 0  ;;  %s408_s26 = scalar_lea.hbm %s790_s4, %s696_s28 }
  0xdc   : > { %s409_s11 = sshll.u32 %s800_s6, 4  ;;  %s742_s12 = sshll.u32 %s204_s30, 4  ;;  %s411_s12 = int_to_ptr.vmem [resolvable:$true] %s742_s12 }
  0xdd   : > { %s745_s13 = sshll.u32 %s408_s26, 4  ;;  %s545_s14 = sshra.s32 %s411_s12, 4  ;;  %s413_s13 = int_to_ptr.hbm [resolvable:$true] %s745_s13  ;;  %s546_s14 = int_to_ptr.vmem [resolvable:$true] %s545_s14 }
  0xde   : > { %s547_s15 = sshrl.u32 %s409_s11, 4  ;;  %s622_s28 = smov [#allocation3]  }
  0xdf   : > { %s552_s16 = scalar_lea.vmem %s546_s14, %s547_s15  ;;  %s556_s2 = scalar_lea.vmem %s622_s28, 4 }
  0xe0   : > { %p553_p0 = scmp.ne.s32.totalorder %s546_s14, %s552_s16  ;;  %p558_p3 = scmp.lt.s32.totalorder %s556_s2, %s552_s16 }
  0xe2   : > { %p554_p1 = pnand %p553_p0, %p489_p13 }
  0xe4   : > { %p555_p2 = pneg %p554_p1 }
  0xe6   : > { %p560_p4 = pnand %p558_p3, %p555_p2 }
  0xe8   : > { %563 = shalt.err (!%p560_p4)
}
  0xe9   : > { %s564_s21 = sshra.s32 %s413_s13, 4  ;;  %s575_s30 = scalar_lea.hbm %s790_s4, 3  ;;  %s565_s21 = int_to_ptr.hbm [resolvable:$true] %s564_s21 }
  0xea   : > { %s571_s23 = scalar_lea.hbm %s565_s21, %s547_s15  ;;  %p576_p9 = scmp.lt.s32.totalorder %s565_s21, %s790_s4 }
  0xeb   : > { %p572_p5 = scmp.ne.s32.totalorder %s565_s21, %s571_s23  ;;  %p577_p10 = scmp.lt.s32.totalorder %s575_s30, %s571_s23 }
  0xed   : > { %p573_p7 = pnand %p572_p5, %p489_p13  ;;  %p578_p11 = por %p577_p10, %p576_p9 }
  0xef   : > { %p574_p8 = pneg %p573_p7 }
  0xf1   : > { %p579_p12 = pnand %p578_p11, %p574_p8 }
  0xf3   : > { %582 = shalt.err (!%p579_p12)
}
  0xf4   : > { %415 = dma.vmem_to_hbm [thread:$0]  (%p489_p13), %s411_s12, %s409_s11, %s413_s13, %s727_s5  }
  0xf5 PF: > { %p499_p0 = scmp.ge.s32.totalorder %s618_s20, 2  ;;  %s424_s9 = sand.u32 1, %s606_s17  }
  0xf6   : > { %s425_s10 = scalar_lea.sflag [#allocation4], %s424_s9 }
  0xf7   : > { %p496_p1 = pnand %p499_p0, %p690_p6 }
  0xf9   : > { %p497_p2 = pneg %p496_p1 }
  0xfb   : > { %601 = dma.done.wait (%p497_p2), %s425_s10, 32  }
  0xfc   : > { %603 = vsyncadd (%p497_p2), %s425_s10, 4294967264  ;;  %p15_p3 = scmp.ge.s32.totalorder %s674_s22, 4   ;;  %s795_s17 = smov %s610_s18 }
  0xfd   : > { %s796_s18 = smov %s614_s19  ;;  %s797_s19 = smov %s684_s25 }
  0xfe   : > { %s798_s20 = smov %s674_s22  ;;  %17 = sbr.rel (!%p15_p3) target bundleno = 5 (0x5), region = 73 }
 0x103   :  { %431 = vsyncpa [#allocation4], 1 }
 0x104   :  { %433 = vsyncpa [#allocation4 + $0x1], 1 }

</bundles_post_ra>
